<compile_context>
chip_gen: v6e
topology: v6e:2x2x1
jax: 0.10.0
libtpu: 0.0.40
codegen_flags: <defaults>
</compile_context>

<pallas_src>
import functools

import jax
import jax.numpy as jnp
from jax.experimental import pallas as pl
from jax.experimental.pallas import tpu as pltpu

_VMEM_LIMIT = 32 * 1024 * 1024  # explicit, fits v5e/v6e/v7x scoped VMEM


def _pair(v):
    return (v, v) if isinstance(v, int) else tuple(v)


def _pick_tile(m, min_steps=2,
               candidates=(2048, 1024, 512, 256, 128, 64, 32, 16, 8)):
    """Largest tile dividing m exactly, preferring >= min_steps grid steps."""
    for t in candidates:
        if m % t == 0 and m // t >= min_steps:
            return t
    for t in candidates:
        if m % t == 0:
            return t
    return None


# ---------------------------------------------------------------------------
# Pallas kernels (MXU hot path; bf16 operands, f32 accumulation & epilogue)
# ---------------------------------------------------------------------------
def _matmul_bias_kernel(a_ref, w_ref, b_ref, o_ref):
    # a: (tm, K) bf16, w: (K, N) bf16, b: (1, N) f32 -> o: (tm, N)
    acc = jnp.dot(a_ref[...], w_ref[...], preferred_element_type=jnp.float32)
    o_ref[...] = (acc + b_ref[...]).astype(o_ref.dtype)


def _glu_fused_kernel(a_ref, w_ref, b_ref, o_ref):
    # a: (tp, K) bf16, w: (2N, K) bf16 (wa rows then wb rows), b: (2N, 1) f32
    # -> o: (N, tp)  (channel-major: lane-dense along the spatial tile)
    z = jax.lax.dot_general(
        w_ref[...], a_ref[...],
        dimension_numbers=(((1,), (1,)), ((), ())),
        preferred_element_type=jnp.float32)            # (2N, tp) f32
    z = z + b_ref[...]
    n = o_ref.shape[0]
    o_ref[...] = (z[:n, :] * jax.nn.sigmoid(z[n:, :])).astype(o_ref.dtype)


def matmul_bias_pallas(a, w, b, out_dtype=jnp.bfloat16):
    """a: (M, K) bf16, w: (K, N) bf16, b: (N,) f32 -> (M, N) out_dtype."""
    m, kdim = a.shape
    n = w.shape[1]
    tm = _pick_tile(m, min_steps=2)
    if tm is None:                               # ragged M: pad (rare fallback)
        tm = 256
        mp = pl.cdiv(m, tm) * tm
        a = jnp.pad(a, ((0, mp - m), (0, 0)))
    else:
        mp = m
    cost = pl.CostEstimate(
        flops=2 * mp * kdim * n, transcendentals=0,
        bytes_accessed=mp * kdim * 2 + kdim * n * 2 + n * 4 + mp * n * 2)
    out = pl.pallas_call(
        _matmul_bias_kernel,
        out_shape=jax.ShapeDtypeStruct((mp, n), out_dtype),
        grid=(mp // tm,),
        in_specs=[
            pl.BlockSpec((tm, kdim), lambda i: (i, 0)),
            pl.BlockSpec((kdim, n), lambda i: (0, 0)),
            pl.BlockSpec((1, n), lambda i: (0, 0)),
        ],
        out_specs=pl.BlockSpec((tm, n), lambda i: (i, 0)),
        compiler_params=pltpu.CompilerParams(
            dimension_semantics=("parallel",),
            vmem_limit_bytes=_VMEM_LIMIT),
        cost_estimate=cost,
    )(a, w, b.reshape(1, n).astype(jnp.float32))
    return out if mp == m else out[:m]


def glu_matmul_pallas(a_bpk, w2, b2, n_out, out_dtype=jnp.float32):
    """Fused GLU: (A@Wa+ba) * sigmoid(A@Wb+bb), single dot, channel-major out.

    a_bpk: (B, P, K) bf16 patches; w2: (2N, K) bf16; b2: (2N,) f32.
    Returns (B, N, P) in out_dtype.
    """
    B, P, K = a_bpk.shape
    n2 = w2.shape[0]
    tp = _pick_tile(P, min_steps=1 if B >= 2 else 2)
    if tp is None:
        tp = 128
        Pp = pl.cdiv(P, tp) * tp
        a_bpk = jnp.pad(a_bpk, ((0, 0), (0, Pp - P), (0, 0)))
    else:
        Pp = P
    cost = pl.CostEstimate(
        flops=2 * B * Pp * K * n2,
        transcendentals=B * Pp * n_out,
        bytes_accessed=B * Pp * K * 2 + n2 * K * 2 + n2 * 4 + B * Pp * n_out * 4)
    out = pl.pallas_call(
        _glu_fused_kernel,
        out_shape=jax.ShapeDtypeStruct((B, n_out, Pp), out_dtype),
        grid=(B, Pp // tp),
        in_specs=[
            pl.BlockSpec((None, tp, K), lambda b, j: (b, j, 0)),
            pl.BlockSpec((n2, K), lambda b, j: (0, 0)),
            pl.BlockSpec((n2, 1), lambda b, j: (0, 0)),
        ],
        out_specs=pl.BlockSpec((None, n_out, tp), lambda b, j: (b, 0, j)),
        compiler_params=pltpu.CompilerParams(
            dimension_semantics=("parallel", "parallel"),
            vmem_limit_bytes=_VMEM_LIMIT),
        cost_estimate=cost,
    )(a_bpk, w2, b2.reshape(n2, 1).astype(jnp.float32))
    return out if Pp == P else out[..., :P]


# ---------------------------------------------------------------------------
# Glue: im2col, sub-pixel transposed-conv plan, weight packing (NHWC internal)
# ---------------------------------------------------------------------------
def _im2col(x_nhwc, kh, kw, stride, dilation):
    B, H, W, C = x_nhwc.shape
    sh, sw = stride
    dh, dw = dilation
    H_out = (H - dh * (kh - 1) - 1) // sh + 1
    W_out = (W - dw * (kw - 1) - 1) // sw + 1
    cols = []
    for i in range(kh):
        for j in range(kw):
            cols.append(x_nhwc[
                :,
                i * dh: i * dh + sh * (H_out - 1) + 1: sh,
                j * dw: j * dw + sw * (W_out - 1) + 1: sw,
                :,
            ])
    # K-axis ordering: (kh, kw, C_in)
    return jnp.concatenate(cols, axis=-1), H_out, W_out


def _w_oikk_to_mat(w_oikk):
    # (C_out, C_in, kh, kw) -> (kh*kw*C_in, C_out) matching _im2col ordering
    c_out, c_in, kh, kw = w_oikk.shape
    return jnp.transpose(w_oikk, (2, 3, 1, 0)).reshape(kh * kw * c_in, c_out)


def _pack_glu_weight(wa, wb):
    # (C1, Cin, kh, kw) x2 -> (2*C1, kh*kw*Cin), K ordering (kh, kw, Cin)
    w = jnp.concatenate([wa, wb], axis=0)
    w = jnp.transpose(w, (0, 2, 3, 1))
    return w.reshape(w.shape[0], -1).astype(jnp.bfloat16)


def _tconv_taps_1d(k, s, p):
    """Per-phase taps of the sub-pixel decomposition (dilation=1).

    For output phase r (= oy mod s):  y[q*s + r] = sum_u x[q + O + u] * w[a(u)]
    over the returned (u, a) pairs, with x treated as zero outside [0, len(x)).
    """
    infos, offs, cs = [], [], []
    for r in range(s):
        rho = (r + p) % s
        t_cnt = ((k - rho) + s - 1) // s if rho < k else 0
        c = (r + p) // s
        infos.append((rho, t_cnt, c))
        offs.append(c - (t_cnt - 1) if t_cnt > 0 else c)
        cs.append(c)
    O = min(offs)
    L = max(cs) - O + 1
    taps = []
    for (rho, t_cnt, c) in infos:
        lst = []
        for u in range(L):
            t = c - O - u
            if 0 <= t < t_cnt:
                lst.append((u, rho + t * s))
        taps.append(lst)
    return L, O, taps


def _tconv_geom_1d(k, s, p, op, x_len):
    L, O, _ = _tconv_taps_1d(k, s, p)
    out_len = (x_len - 1) * s - 2 * p + (k - 1) + op + 1
    q_max = (out_len + s - 1) // s
    pad_lo = max(0, -O)
    pad_hi = max(0, (q_max - 1) + O + (L - 1) - (x_len - 1))
    base = O + pad_lo
    return out_len, q_max, L, pad_lo, pad_hi, base


def _pack_tconv_weight_subpixel(wt, bt, k, s, p):
    """ConvTranspose2d weight (Cin,Cout,kh,kw) -> window-conv weight
    (Lh*Lw*Cin, sh*sw*Cout) + tiled bias for the sub-pixel path (dilation=1)."""
    cin, cout, kh, kw = wt.shape
    Lh, _, taps_h = _tconv_taps_1d(k[0], s[0], p[0])
    Lw, _, taps_w = _tconv_taps_1d(k[1], s[1], p[1])
    sh, sw = s
    wbig = jnp.zeros((Lh, Lw, cin, sh * sw, cout), jnp.float32)
    for r in range(sh):
        for q in range(sw):
            for (u, a) in taps_h[r]:
                for (v, b) in taps_w[q]:
                    wbig = wbig.at[u, v, :, r * sw + q, :].set(wt[:, :, a, b])
    wbig = wbig.reshape(Lh * Lw * cin, sh * sw * cout).astype(jnp.bfloat16)
    bbig = jnp.tile(bt, sh * sw).astype(jnp.float32)
    return wbig, bbig


def _tconv_subpixel_apply(x_nhwc, w_mat, b_vec, k, s, p, op):
    """Sub-pixel transposed conv (dilation=1): window conv + pixel shuffle."""
    B, H, W, _ = x_nhwc.shape
    sh, sw = s
    c0 = b_vec.shape[0] // (sh * sw)
    Hout, Qh, Lh, plo_h, phi_h, base_h = _tconv_geom_1d(k[0], sh, p[0], op[0], H)
    Wout, Qw, Lw, plo_w, phi_w, base_w = _tconv_geom_1d(k[1], sw, p[1], op[1], W)
    xp = jnp.pad(x_nhwc, ((0, 0), (plo_h, phi_h), (plo_w, phi_w), (0, 0)))
    cols = []
    for u in range(Lh):
        for v in range(Lw):
            cols.append(xp[:, base_h + u: base_h + u + Qh,
                           base_w + v: base_w + v + Qw, :])
    patches = jnp.concatenate(cols, axis=-1)          # (B, Qh, Qw, Lh*Lw*Cin)
    K = patches.shape[-1]
    y = matmul_bias_pallas(patches.reshape(B * Qh * Qw, K), w_mat, b_vec,
                           out_dtype=jnp.bfloat16)    # (M, sh*sw*c0)
    y = y.reshape(B, Qh, Qw, sh, sw, c0)
    y = jnp.transpose(y, (0, 1, 3, 2, 4, 5)).reshape(B, Qh * sh, Qw * sw, c0)
    return y[:, :Hout, :Wout, :]


def _tconv_input_zeroinsert(x, k, s, p, op, d):
    """General fallback (dilation != 1): zero-insert + pad for an eq. conv."""
    B, H, W, C = x.shape
    kh, kw = k
    sh, sw = s
    ph, pw = p
    dh, dw = d
    oph, opw = op
    xd = jnp.zeros((B, (H - 1) * sh + 1, (W - 1) * sw + 1, C), x.dtype)
    xd = xd.at[:, ::sh, ::sw, :].set(x)
    pt = dh * (kh - 1) - ph
    pl_ = dw * (kw - 1) - pw
    assert pt >= 0 and pl_ >= 0, "padding > dilation*(k-1) not supported"
    return jnp.pad(xd, ((0, 0), (pt, pt + oph), (pl_, pl_ + opw), (0, 0)))


def _tconv_equiv(x, w_iokk, stride, padding, out_padding, dilation):
    kh, kw = w_iokk.shape[2], w_iokk.shape[3]
    xp = _tconv_input_zeroinsert(x, (kh, kw), stride, padding, out_padding,
                                 dilation)
    w_eq = jnp.transpose(jnp.flip(w_iokk, axis=(2, 3)), (1, 0, 2, 3))
    return xp, w_eq


# ---------------------------------------------------------------------------
# Parameter packing + GCUNet2Decoder forward
# ---------------------------------------------------------------------------
def prepare_params(params, *, kernel_size, stride, padding, out_padding,
                   dilation):
    """Pack / cast the torch-layout weights once into bf16 matmul operands."""
    del out_padding  # geometry only; handled in the forward pass
    k, s, p, d = (_pair(kernel_size), _pair(stride), _pair(padding),
                  _pair(dilation))
    prep = {}
    if d == (1, 1):
        wt_mat, bt_vec = _pack_tconv_weight_subpixel(params["wt"], params["bt"],
                                                     k, s, p)
    else:
        # zero-insertion fallback: flipped / channel-swapped equivalent conv
        w_eq = jnp.transpose(jnp.flip(params["wt"], axis=(2, 3)), (1, 0, 2, 3))
        wt_mat = _w_oikk_to_mat(w_eq).astype(jnp.bfloat16)
        bt_vec = params["bt"].astype(jnp.float32)
    prep["wt_mat"] = wt_mat
    prep["bt_vec"] = bt_vec
    prep["w_glu"] = _pack_glu_weight(params["wa"], params["wb"])
    prep["b_glu"] = jnp.concatenate(
        [params["ba"], params["bb"]]).astype(jnp.float32)
    return prep


def gcunet2_decoder_forward(x_nchw, prep, *, kernel_size, stride, padding,
                            out_padding, dilation, input_aux_nchw=None,
                            drop=0.0):
    k, s, p = _pair(kernel_size), _pair(stride), _pair(padding)
    op, d = _pair(out_padding), _pair(dilation)
    x = jnp.transpose(x_nchw, (0, 2, 3, 1)).astype(jnp.bfloat16)  # NCHW -> NHWC

    # --- Conv2dTp (transposed conv) ---
    if d == (1, 1):
        hu = _tconv_subpixel_apply(x, prep["wt_mat"], prep["bt_vec"], k, s, p, op)
    else:
        c0 = prep["bt_vec"].shape[0]
        xp = _tconv_input_zeroinsert(x, k, s, p, op, d)
        patches, Ho, Wo = _im2col(xp, k[0], k[1], (1, 1), d)
        y = matmul_bias_pallas(patches.reshape(-1, patches.shape[-1]),
                               prep["wt_mat"], prep["bt_vec"],
                               out_dtype=jnp.bfloat16)
        hu = y.reshape(x.shape[0], Ho, Wo, c0)

    # --- optional aux concat (torch.cat dim=1 == channel axis) ---
    if input_aux_nchw is not None:
        aux = jnp.transpose(input_aux_nchw, (0, 2, 3, 1)).astype(hu.dtype)
        hu = jnp.concatenate([hu, aux], axis=-1)

    # drop: eval-mode dropout is the identity.
    # TODO(synk): training-mode dropout not implemented.

    # --- Glu2d: conv_a(hu) * sigmoid(conv_b(hu)), stride 1, fused kernel ---
    c1 = prep["b_glu"].shape[0] // 2
    ph, pw = p
    hup = jnp.pad(hu, ((0, 0), (ph, ph), (pw, pw), (0, 0)))
    patches, Ho, Wo = _im2col(hup, k[0], k[1], (1, 1), d)
    B = hu.shape[0]
    out = glu_matmul_pallas(patches.reshape(B, Ho * Wo, -1),
                            prep["w_glu"], prep["b_glu"], c1)      # (B, C1, P)
    return out.reshape(B, c1, Ho, Wo)                 # NCHW directly (no transpose)


def init_params(key, in_channels, out_channels, kernel_size, aux_dim=0):
    c0, c1 = out_channels
    k = kernel_size
    c_glu_in = c0 + aux_dim
    ks = jax.random.split(key, 6)
    scale = 0.1
    return {
        # Conv2dTp (torch ConvTranspose2d weight layout: (Cin, Cout, kh, kw))
        "wt": scale * jax.random.normal(ks[0], (in_channels, c0, k, k), jnp.float32),
        "bt": scale * jax.random.normal(ks[1], (c0,), jnp.float32),
        # Glu2d: two convs (Cout, Cin, kh, kw)
        "wa": scale * jax.random.normal(ks[2], (c1, c_glu_in, k, k), jnp.float32),
        "ba": scale * jax.random.normal(ks[3], (c1,), jnp.float32),
        "wb": scale * jax.random.normal(ks[4], (c1, c_glu_in, k, k), jnp.float32),
        "bb": scale * jax.random.normal(ks[5], (c1,), jnp.float32),
    }


# ---------------------------------------------------------------------------
# Pure-JAX reference (lax conv, f32) for checking the Pallas path
# ---------------------------------------------------------------------------
def _conv_ref(x_nhwc, w_oikk, b, stride, padding, dilation):
    w_hwio = jnp.transpose(w_oikk, (2, 3, 1, 0))
    y = jax.lax.conv_general_dilated(
        x_nhwc, w_hwio, window_strides=stride, padding=padding,
        rhs_dilation=dilation, dimension_numbers=("NHWC", "HWIO", "NHWC"))
    return y + b


def reference_forward(x_nchw, params, *, kernel_size, stride, padding,
                      out_padding, dilation):
    del kernel_size
    s, p = _pair(stride), _pair(padding)
    op, d = _pair(out_padding), _pair(dilation)
    x = jnp.transpose(x_nchw, (0, 2, 3, 1))
    xp, w_eq = _tconv_equiv(x, params["wt"], s, p, op, d)
    hu = _conv_ref(xp, w_eq, params["bt"], (1, 1), [(0, 0), (0, 0)], d)
    za = _conv_ref(hu, params["wa"], params["ba"], (1, 1), [p, p], d)
    zb = _conv_ref(hu, params["wb"], params["bb"], (1, 1), [p, p], d)
    h1 = za * jax.nn.sigmoid(zb)
    return jnp.transpose(h1, (0, 3, 1, 2))


# ---------------------------------------------------------------------------
if __name__ == "__main__":
    B, C_in, H, W = 2, 4, 16, 16
    out_channels = [8, 8]
    kernel_size, stride, padding, out_padding, dilation, aux_dim = 3, 2, 1, 1, 1, 0

    root = jax.random.PRNGKey(0)
    kx, kp = jax.random.split(root, 2)
    x = jax.random.normal(kx, (B, C_in, H, W), jnp.float32)
    params = init_params(kp, C_in, out_channels, kernel_size, aux_dim)

    cfg = dict(kernel_size=kernel_size, stride=stride, padding=padding,
               out_padding=out_padding, dilation=dilation)
    prep = prepare_params(params, **cfg)

    fwd = jax.jit(functools.partial(gcunet2_decoder_forward, **cfg))
    y = jax.block_until_ready(fwd(x, prep))

    # transposed conv: (16-1)*2 - 2*1 + (3-1) + 1 + 1 = 32 -> (2, 8, 32, 32)
    assert y.shape == (B, out_channels[1], 32, 32), y.shape

    y_ref = reference_forward(x, params, **cfg)
    err = float(jnp.max(jnp.abs(y - y_ref)))
    if err > 5e-2:   # bf16 operands, f32 accumulation
        raise AssertionError(f"Pallas result mismatch vs reference: max|diff|={err}")

    print("KERNEL_OK")
</pallas_src>

<mosaic_0001>
module attributes {stable_mosaic.version = 11 : i64} {
  func.func @_matmul_bias_kernel(%arg0: i32, %arg1: memref<256x16xbf16, #tpu.memory_space<vmem>>, %arg2: memref<16x32xbf16, #tpu.memory_space<vmem>>, %arg3: memref<1x32xf32, #tpu.memory_space<vmem>>, %arg4: memref<256x32xbf16, #tpu.memory_space<vmem>>) attributes {dimension_semantics = [#tpu.dimension_semantics<parallel>], iteration_bounds = array<i64: 2>, scalar_prefetch = 0 : i64, scratch_operands = 0 : i64, tpu.core_type = #tpu.core_type<tc>, window_params = [{transform_indices = @transform_0, window_bounds = array<i64: 256, 16>}, {pipeline_mode = #tpu.pipeline_mode<synchronous>, transform_indices = @transform_1, window_bounds = array<i64: 16, 32>}, {pipeline_mode = #tpu.pipeline_mode<synchronous>, transform_indices = @transform_2, window_bounds = array<i64: 1, 32>}, {transform_indices = @transform_3, window_bounds = array<i64: 256, 32>}]} {
    %c0 = arith.constant 0 : index
    %c0_0 = arith.constant 0 : index
    %0 = vector.load %arg1[%c0, %c0_0] : memref<256x16xbf16, #tpu.memory_space<vmem>>, vector<256x16xbf16>
    %c0_1 = arith.constant 0 : index
    %c0_2 = arith.constant 0 : index
    %1 = vector.load %arg2[%c0_1, %c0_2] : memref<16x32xbf16, #tpu.memory_space<vmem>>, vector<16x32xbf16>
    %cst = arith.constant dense<0.000000e+00> : vector<256x32xf32>
    %2 = tpu.matmul %0, %1, %cst {dimension_numbers = #tpu.dot_dimension_numbers<[1], [0], [0], [1], [0, 0, 1, 1], [], []>} : vector<256x16xbf16>, vector<16x32xbf16>, vector<256x32xf32> -> vector<256x32xf32>
    %c0_3 = arith.constant 0 : index
    %c0_4 = arith.constant 0 : index
    %3 = vector.load %arg3[%c0_3, %c0_4] : memref<1x32xf32, #tpu.memory_space<vmem>>, vector<1x32xf32>
    %4 = vector.broadcast %3 : vector<1x32xf32> to vector<256x32xf32>
    %5 = arith.addf %2, %4 : vector<256x32xf32>
    %6 = arith.truncf %5 : vector<256x32xf32> to vector<256x32xbf16>
    %c0_5 = arith.constant 0 : index
    %c0_6 = arith.constant 0 : index
    %7 = vector.load %arg4[%c0_5, %c0_6] : memref<256x32xbf16, #tpu.memory_space<vmem>>, vector<256x32xbf16>
    tpu.vector_store %arg4[%c0_5, %c0_6], %6 {strides = array<i32>} : memref<256x32xbf16, #tpu.memory_space<vmem>>, vector<256x32xbf16>,
    return
  }
  func.func @transform_0(%arg0: i32) -> (i32, i32) {
    %c0_i32 = arith.constant 0 : i32
    %c0_i32_0 = arith.constant 0 : i32
    return %arg0, %c0_i32 : i32, i32
  }
  func.func @transform_1(%arg0: i32) -> (i32, i32) {
    %c0_i32 = arith.constant 0 : i32
    %c0_i32_0 = arith.constant 0 : i32
    %c0_i32_1 = arith.constant 0 : i32
    return %c0_i32, %c0_i32_0 : i32, i32
  }
  func.func @transform_2(%arg0: i32) -> (i32, i32) {
    %c0_i32 = arith.constant 0 : i32
    %c0_i32_0 = arith.constant 0 : i32
    %c0_i32_1 = arith.constant 0 : i32
    return %c0_i32, %c0_i32_0 : i32, i32
  }
  func.func @transform_3(%arg0: i32) -> (i32, i32) {
    %c0_i32 = arith.constant 0 : i32
    %c0_i32_0 = arith.constant 0 : i32
    return %arg0, %c0_i32 : i32, i32
  }
}

module attributes {stable_mosaic.version = 11 : i64} {
  func.func @_glu_fused_kernel(%arg0: i32, %arg1: i32, %arg2: memref<1x1024x72xbf16, #tpu.memory_space<vmem>>, %arg3: memref<16x72xbf16, #tpu.memory_space<vmem>>, %arg4: memref<16x1xf32, #tpu.memory_space<vmem>>, %arg5: memref<1x8x1024xf32, #tpu.memory_space<vmem>>) attributes {dimension_semantics = [#tpu.dimension_semantics<parallel>, #tpu.dimension_semantics<parallel>], iteration_bounds = array<i64: 2, 1>, scalar_prefetch = 0 : i64, scratch_operands = 0 : i64, tpu.core_type = #tpu.core_type<tc>, window_params = [{transform_indices = @transform_0, window_bounds = array<i64: 1, 1024, 72>}, {pipeline_mode = #tpu.pipeline_mode<synchronous>, transform_indices = @transform_1, window_bounds = array<i64: 16, 72>}, {pipeline_mode = #tpu.pipeline_mode<synchronous>, transform_indices = @transform_2, window_bounds = array<i64: 16, 1>}, {transform_indices = @transform_3, window_bounds = array<i64: 1, 8, 1024>}]} {
    %c0 = arith.constant 0 : index
    %c0_0 = arith.constant 0 : index
    %0 = vector.load %arg3[%c0, %c0_0] : memref<16x72xbf16, #tpu.memory_space<vmem>>, vector<16x72xbf16>
    %c0_1 = arith.constant 0 : index
    %c0_2 = arith.constant 0 : index
    %c0_3 = arith.constant 0 : index
    %1 = vector.load %arg2[%c0_1, %c0_2, %c0_3] : memref<1x1024x72xbf16, #tpu.memory_space<vmem>>, vector<1x1024x72xbf16>
    %2 = vector.shape_cast %1 : vector<1x1024x72xbf16> to vector<1024x72xbf16>
    %cst = arith.constant dense<0.000000e+00> : vector<16x1024xf32>
    %3 = tpu.matmul %0, %2, %cst {dimension_numbers = #tpu.dot_dimension_numbers<[1], [1], [0], [0], [0, 0, 1, 0], [], []>} : vector<16x72xbf16>, vector<1024x72xbf16>, vector<16x1024xf32> -> vector<16x1024xf32>
    %c0_4 = arith.constant 0 : index
    %c0_5 = arith.constant 0 : index
    %4 = vector.load %arg4[%c0_4, %c0_5] : memref<16x1xf32, #tpu.memory_space<vmem>>, vector<16x1xf32>
    %5 = vector.broadcast %4 : vector<16x1xf32> to vector<16x1024xf32>
    %6 = arith.addf %3, %5 : vector<16x1024xf32>
    %7 = vector.extract_strided_slice %6 {offsets = [0, 0], sizes = [8, 1024], strides = [1, 1]} : vector<16x1024xf32> to vector<8x1024xf32>
    %8 = vector.extract_strided_slice %6 {offsets = [8, 0], sizes = [8, 1024], strides = [1, 1]} : vector<16x1024xf32> to vector<8x1024xf32>
    %9 = arith.negf %8 : vector<8x1024xf32>
    %10 = math.exp %9 : vector<8x1024xf32>
    %cst_6 = arith.constant 1.000000e+00 : f32
    %11 = vector.broadcast %cst_6 : f32 to vector<8x1024xf32>
    %12 = arith.addf %11, %10 : vector<8x1024xf32>
    %13 = arith.divf %11, %12 : vector<8x1024xf32>
    %14 = arith.mulf %7, %13 : vector<8x1024xf32>
    %c0_7 = arith.constant 0 : index
    %c0_8 = arith.constant 0 : index
    %c0_9 = arith.constant 0 : index
    %15 = vector.load %arg5[%c0_7, %c0_8, %c0_9] : memref<1x8x1024xf32, #tpu.memory_space<vmem>>, vector<1x8x1024xf32>
    %16 = vector.shape_cast %15 : vector<1x8x1024xf32> to vector<8x1024xf32>
    %17 = vector.shape_cast %14 : vector<8x1024xf32> to vector<1x8x1024xf32>
    tpu.vector_store %arg5[%c0_7, %c0_8, %c0_9], %17 {strides = array<i32>} : memref<1x8x1024xf32, #tpu.memory_space<vmem>>, vector<1x8x1024xf32>,
    return
  }
  func.func @transform_0(%arg0: i32, %arg1: i32) -> (i32, i32, i32) {
    %c0_i32 = arith.constant 0 : i32
    %c0_i32_0 = arith.constant 0 : i32
    return %arg0, %arg1, %c0_i32 : i32, i32, i32
  }
  func.func @transform_1(%arg0: i32, %arg1: i32) -> (i32, i32) {
    %c0_i32 = arith.constant 0 : i32
    %c0_i32_0 = arith.constant 0 : i32
    %c0_i32_1 = arith.constant 0 : i32
    return %c0_i32, %c0_i32_0 : i32, i32
  }
  func.func @transform_2(%arg0: i32, %arg1: i32) -> (i32, i32) {
    %c0_i32 = arith.constant 0 : i32
    %c0_i32_0 = arith.constant 0 : i32
    %c0_i32_1 = arith.constant 0 : i32
    return %c0_i32, %c0_i32_0 : i32, i32
  }
  func.func @transform_3(%arg0: i32, %arg1: i32) -> (i32, i32, i32) {
    %c0_i32 = arith.constant 0 : i32
    %c0_i32_0 = arith.constant 0 : i32
    return %arg0, %c0_i32, %arg1 : i32, i32, i32
  }
}

</mosaic_0001>

<bundles_post_ra>
// kernel: gcunet2_decoder_forward.2
= control target key start
LH: loop header
LB: loop body
LE: loop exit
PB: predicated region body
PF: predicated region fallthrough
CT: control target
= control target key end

     0   :  { %s944_s12 = smov 0   ;;  %s1108_s0 = inlined_call_operand.vmem [shape: bf16[512,16], index: 0, kind: input, shape index: {}]   ;;  %s1109_s1 = inlined_call_operand.vmem [shape: bf16[16,32], index: 1, kind: input, shape index: {}]   ;;  %s1110_s2 = inlined_call_operand.vmem [shape: f32[1,32], index: 2, kind: input, shape index: {}]   ;;  %s1111_s3 = inlined_call_operand.vmem [shape: bf16[512,32], index: 3, kind: output, shape index: {}]  }
   0x1 LB: > { %s729_s13 = sadd.s32 4294967295, %s922_s12   ;;  %p733_p0 = scmp.ge.s32.totalorder %s922_s12, 1  ;;  %s922_s12 = sphi %s944_s12, %s13_s12  }
   0x2   : > { %p138_p1 = scmp.lt.s32.totalorder %s922_s12, 3 }
   0x4   : > { %p139_p2 = pnand %p733_p0, %p138_p1 }
   0x5   : > { %s734_s16 = sshll.u32 (!%p139_p2), %s729_s13, 5 }
   0x6   : > { %142 = sbr.rel (%p139_p2) target bundleno = 245 (0xf5), region = 32  ;;  %p163_p3 = scmp.lt.s32.totalorder (!%p139_p2), %s734_s16, 63 }
   0xb   : > { %v899_v0 = vld [vmem:[%s1109_s1] sm:$0xff]   ;;  %s1113_s16 = smov (!%p163_p3, %s734_s16), 63  ;;  %vm302_vm0 = vcmask 130048   ;;  %vm640_vm1 = vcmask 257024  }
   0xc   : > { %855 = vmatprep.subr.bf16.mxu0 %v899_v0  ;;  %889 = vmatprep.subr.bf16.mxu1 %v899_v0  ;;  %s735_s17 = sshll.u32 %s1113_s16, 2  ;;  %v1000_v17 = vld [vmem:[%s1110_s2] ss:$0 sm:$0xff] }
   0xd   : > { %856 = vmatpush3.bf16.msra.mxu0 %v899_v0  ;;  %890 = vmatpush3.bf16.msra.mxu1 %v899_v0  ;;  %s963_s20 = scalar_lea.vmem %s1108_s0, %s735_s17  ;;  %s1008_s25 = scalar_lea.vmem %s1111_s3, %s735_s17 }
   0xe   : > { %v900_v1 = vld [vmem:[%s963_s20] sm:$0xff]   ;;  %v902_v3 = vld [vmem:[%s963_s20 + $0x8] sm:$0xff]   ;;  %v904_v5 = vld [vmem:[%s963_s20 + $0x10] sm:$0xff]  }
   0xf   : > { %v901_v2 = vld [vmem:[%s963_s20 + $0x40] sm:$0xff]   ;;  %857 = vmatprep.mubr.msk.bf16.mxu0 %vm302_vm0, %v900_v1  ;;  %v903_v4 = vld [vmem:[%s963_s20 + $0x48] sm:$0xff]   ;;  %v905_v6 = vld [vmem:[%s963_s20 + $0x50] sm:$0xff]  }
  0x10   : > { %873 = vmatprep.mubr.msk.bf16.mxu1 %vm302_vm0, %v901_v2  ;;  %858 = vmatmul.mubr.msk.bf16.vlgmr.msra.gmra.mxu0 %vm302_vm0, %v902_v3  ;;  %v906_v7 = vld [vmem:[%s963_s20 + $0x18] sm:$0xff]   ;;  %v908_v9 = vld [vmem:[%s963_s20 + $0x20] sm:$0xff]   ;;  %v910_v11 = vld [vmem:[%s963_s20 + $0x28] sm:$0xff]  }
  0x11   : > { %874 = vmatmul.mubr.msk.bf16.vlgmr.msra.gmra.mxu1 %vm302_vm0, %v903_v4  ;;  %861 = vmatprep.mubr.msk.bf16.mxu0 %vm302_vm0, %v904_v5  ;;  %v907_v8 = vld [vmem:[%s963_s20 + $0x58] sm:$0xff]   ;;  %v909_v10 = vld [vmem:[%s963_s20 + $0x60] sm:$0xff]   ;;  %v911_v12 = vld [vmem:[%s963_s20 + $0x68] sm:$0xff]  }
  0x12   : > { %877 = vmatprep.mubr.msk.bf16.mxu1 %vm302_vm0, %v905_v6  ;;  %v912_v13 = vld [vmem:[%s963_s20 + $0x30] sm:$0xff]   ;;  %v914_v15 = vld [vmem:[%s963_s20 + $0x38] sm:$0xff]  }
  0x13   : > { %v913_v14 = vld [vmem:[%s963_s20 + $0x70] sm:$0xff]   ;;  %v915_v16 = vld [vmem:[%s963_s20 + $0x78] sm:$0xff]  }
  0x18   : > { %862 = vmatmul.mubr.msk.bf16.gmra.mxu0 %vm302_vm0, %v906_v7 }
  0x19   : > { %878 = vmatmul.mubr.msk.bf16.gmra.mxu1 %vm302_vm0, %v907_v8  ;;  %865 = vmatprep.mubr.msk.bf16.mxu0 %vm302_vm0, %v908_v9 }
  0x1a   : > { %881 = vmatprep.mubr.msk.bf16.mxu1 %vm302_vm0, %v909_v10 }
  0x20   : > { %866 = vmatmul.mubr.msk.bf16.gmra.mxu0 %vm302_vm0, %v910_v11 }
  0x21   : > { %882 = vmatmul.mubr.msk.bf16.gmra.mxu1 %vm302_vm0, %v911_v12  ;;  %869 = vmatprep.mubr.msk.bf16.mxu0 %vm302_vm0, %v912_v13 }
  0x22   : > { %885 = vmatprep.mubr.msk.bf16.mxu1 %vm302_vm0, %v913_v14 }
  0x28   : > { %870 = vmatmul.mubr.msk.bf16.gmra.mxu0 %vm302_vm0, %v914_v15 }
  0x29   : > { %886 = vmatmul.mubr.msk.bf16.gmra.mxu1 %vm302_vm0, %v915_v16 }
  0xd0   : > { %v859_v18 = vpop.f32.mrf.mxu0 }
  0xd1   : > { %v394_v19 = vadd.f32 %v859_v18, %v1000_v17  ;;  %v875_v20 = vpop.f32.mrf.mxu1 }
  0xd2   : > { %v458_v21 = vadd.f32 %v875_v20, %v1000_v17  ;;  %v385_v22 = vpop.f32.mrf.mxu0 }
  0xd3   : > { %v808_v23 = vpack.c.bf16 %v394_v19, %v394_v19  ;;  %v386_v24 = vadd.f32 %v1000_v17, %v385_v22  ;;  %v449_v25 = vpop.f32.mrf.mxu1 }
  0xd4   : > { %v824_v26 = vpack.c.bf16 %v458_v21, %v458_v21  ;;  %v450_v27 = vadd.f32 %v1000_v17, %v449_v25  ;;  %v860_v28 = vpop.f32.mrf.mxu0 }
  0xd5   : > { %643 = vst.msk [vmem:[%s1008_s25 + $0x8] sm:$0xf] %vm640_vm1, %v808_v23  ;;  %v806_v29 = vpack.c.bf16 %v386_v24, %v386_v24  ;;  %v397_v30 = vadd.f32 %v860_v28, %v1000_v17  ;;  %v876_v31 = vpop.f32.mrf.mxu1 }
  0xd6   : > { %659 = vst.msk [vmem:[%s1008_s25 + $0x48] sm:$0xf] %vm640_vm1, %v824_v26  ;;  %v822_v32 = vpack.c.bf16 %v450_v27, %v450_v27  ;;  %v461_v33 = vadd.f32 %v876_v31, %v1000_v17  ;;  %v388_v34 = vpop.f32.mrf.mxu0 }
  0xd7   : > { %641 = vst.msk [vmem:[%s1008_s25] sm:$0xf] %vm640_vm1, %v806_v29  ;;  %v809_v35 = vpack.c.bf16 %v397_v30, %v397_v30  ;;  %v389_v36 = vadd.f32 %v1000_v17, %v388_v34  ;;  %v452_v37 = vpop.f32.mrf.mxu1 }
  0xd8   : > { %657 = vst.msk [vmem:[%s1008_s25 + $0x40] sm:$0xf] %vm640_vm1, %v822_v32  ;;  %v825_v38 = vpack.c.bf16 %v461_v33, %v461_v33  ;;  %v453_v39 = vadd.f32 %v1000_v17, %v452_v37  ;;  %v863_v40 = vpop.f32.mrf.mxu0 }
  0xd9   : > { %644 = vst.msk [vmem:[%s1008_s25 + $0xc] sm:$0xf] %vm640_vm1, %v809_v35  ;;  %v807_v41 = vpack.c.bf16 %v389_v36, %v389_v36  ;;  %v410_v42 = vadd.f32 %v863_v40, %v1000_v17  ;;  %v879_v43 = vpop.f32.mrf.mxu1 }
  0xda   : > { %660 = vst.msk [vmem:[%s1008_s25 + $0x4c] sm:$0xf] %vm640_vm1, %v825_v38  ;;  %v823_v44 = vpack.c.bf16 %v453_v39, %v453_v39  ;;  %v474_v45 = vadd.f32 %v879_v43, %v1000_v17  ;;  %v401_v46 = vpop.f32.mrf.mxu0 }
  0xdb   : > { %642 = vst.msk [vmem:[%s1008_s25 + $0x4] sm:$0xf] %vm640_vm1, %v807_v41  ;;  %v812_v47 = vpack.c.bf16 %v410_v42, %v410_v42  ;;  %v402_v48 = vadd.f32 %v1000_v17, %v401_v46  ;;  %v465_v49 = vpop.f32.mrf.mxu1 }
  0xdc   : > { %658 = vst.msk [vmem:[%s1008_s25 + $0x44] sm:$0xf] %vm640_vm1, %v823_v44  ;;  %v828_v50 = vpack.c.bf16 %v474_v45, %v474_v45  ;;  %v466_v51 = vadd.f32 %v1000_v17, %v465_v49  ;;  %v864_v52 = vpop.f32.mrf.mxu0 }
  0xdd   : > { %647 = vst.msk [vmem:[%s1008_s25 + $0x18] sm:$0xf] %vm640_vm1, %v812_v47  ;;  %v810_v53 = vpack.c.bf16 %v402_v48, %v402_v48  ;;  %v413_v54 = vadd.f32 %v864_v52, %v1000_v17  ;;  %v880_v55 = vpop.f32.mrf.mxu1 }
  0xde   : > { %663 = vst.msk [vmem:[%s1008_s25 + $0x58] sm:$0xf] %vm640_vm1, %v828_v50  ;;  %v826_v56 = vpack.c.bf16 %v466_v51, %v466_v51  ;;  %v477_v57 = vadd.f32 %v880_v55, %v1000_v17  ;;  %v404_v58 = vpop.f32.mrf.mxu0 }
  0xdf   : > { %645 = vst.msk [vmem:[%s1008_s25 + $0x10] sm:$0xf] %vm640_vm1, %v810_v53  ;;  %v813_v59 = vpack.c.bf16 %v413_v54, %v413_v54  ;;  %v405_v60 = vadd.f32 %v1000_v17, %v404_v58  ;;  %v468_v61 = vpop.f32.mrf.mxu1 }
  0xe0   : > { %661 = vst.msk [vmem:[%s1008_s25 + $0x50] sm:$0xf] %vm640_vm1, %v826_v56  ;;  %v829_v62 = vpack.c.bf16 %v477_v57, %v477_v57  ;;  %v469_v63 = vadd.f32 %v1000_v17, %v468_v61  ;;  %v867_v0 = vpop.f32.mrf.mxu0 }
  0xe1   : > { %648 = vst.msk [vmem:[%s1008_s25 + $0x1c] sm:$0xf] %vm640_vm1, %v813_v59  ;;  %v811_v1 = vpack.c.bf16 %v405_v60, %v405_v60  ;;  %v426_v2 = vadd.f32 %v867_v0, %v1000_v17  ;;  %v883_v3 = vpop.f32.mrf.mxu1 }
  0xe2   : > { %664 = vst.msk [vmem:[%s1008_s25 + $0x5c] sm:$0xf] %vm640_vm1, %v829_v62  ;;  %v827_v4 = vpack.c.bf16 %v469_v63, %v469_v63  ;;  %v490_v5 = vadd.f32 %v883_v3, %v1000_v17  ;;  %v417_v6 = vpop.f32.mrf.mxu0 }
  0xe3   : > { %646 = vst.msk [vmem:[%s1008_s25 + $0x14] sm:$0xf] %vm640_vm1, %v811_v1  ;;  %v816_v7 = vpack.c.bf16 %v426_v2, %v426_v2  ;;  %v418_v8 = vadd.f32 %v1000_v17, %v417_v6  ;;  %v481_v9 = vpop.f32.mrf.mxu1 }
  0xe4   : > { %662 = vst.msk [vmem:[%s1008_s25 + $0x54] sm:$0xf] %vm640_vm1, %v827_v4  ;;  %v832_v10 = vpack.c.bf16 %v490_v5, %v490_v5  ;;  %v482_v11 = vadd.f32 %v1000_v17, %v481_v9  ;;  %v868_v12 = vpop.f32.mrf.mxu0 }
  0xe5   : > { %651 = vst.msk [vmem:[%s1008_s25 + $0x28] sm:$0xf] %vm640_vm1, %v816_v7  ;;  %v814_v13 = vpack.c.bf16 %v418_v8, %v418_v8  ;;  %v429_v14 = vadd.f32 %v868_v12, %v1000_v17  ;;  %v884_v15 = vpop.f32.mrf.mxu1 }
  0xe6   : > { %667 = vst.msk [vmem:[%s1008_s25 + $0x68] sm:$0xf] %vm640_vm1, %v832_v10  ;;  %v830_v16 = vpack.c.bf16 %v482_v11, %v482_v11  ;;  %v493_v18 = vadd.f32 %v884_v15, %v1000_v17  ;;  %v420_v19 = vpop.f32.mrf.mxu0 }
  0xe7   : > { %649 = vst.msk [vmem:[%s1008_s25 + $0x20] sm:$0xf] %vm640_vm1, %v814_v13  ;;  %v817_v20 = vpack.c.bf16 %v429_v14, %v429_v14  ;;  %v421_v21 = vadd.f32 %v1000_v17, %v420_v19  ;;  %v484_v22 = vpop.f32.mrf.mxu1 }
  0xe8   : > { %665 = vst.msk [vmem:[%s1008_s25 + $0x60] sm:$0xf] %vm640_vm1, %v830_v16  ;;  %v833_v23 = vpack.c.bf16 %v493_v18, %v493_v18  ;;  %v485_v24 = vadd.f32 %v1000_v17, %v484_v22  ;;  %v871_v25 = vpop.f32.mrf.mxu0 }
  0xe9   : > { %652 = vst.msk [vmem:[%s1008_s25 + $0x2c] sm:$0xf] %vm640_vm1, %v817_v20  ;;  %v815_v26 = vpack.c.bf16 %v421_v21, %v421_v21  ;;  %v442_v27 = vadd.f32 %v871_v25, %v1000_v17  ;;  %v887_v28 = vpop.f32.mrf.mxu1 }
  0xea   : > { %668 = vst.msk [vmem:[%s1008_s25 + $0x6c] sm:$0xf] %vm640_vm1, %v833_v23  ;;  %v831_v29 = vpack.c.bf16 %v485_v24, %v485_v24  ;;  %v506_v30 = vadd.f32 %v887_v28, %v1000_v17  ;;  %v433_v31 = vpop.f32.mrf.mxu0 }
  0xeb   : > { %650 = vst.msk [vmem:[%s1008_s25 + $0x24] sm:$0xf] %vm640_vm1, %v815_v26  ;;  %v820_v32 = vpack.c.bf16 %v442_v27, %v442_v27  ;;  %v434_v33 = vadd.f32 %v1000_v17, %v433_v31  ;;  %v497_v34 = vpop.f32.mrf.mxu1 }
  0xec   : > { %666 = vst.msk [vmem:[%s1008_s25 + $0x64] sm:$0xf] %vm640_vm1, %v831_v29  ;;  %v836_v35 = vpack.c.bf16 %v506_v30, %v506_v30  ;;  %v498_v36 = vadd.f32 %v1000_v17, %v497_v34  ;;  %v872_v37 = vpop.f32.mrf.mxu0 }
  0xed   : > { %655 = vst.msk [vmem:[%s1008_s25 + $0x38] sm:$0xf] %vm640_vm1, %v820_v32  ;;  %v818_v38 = vpack.c.bf16 %v434_v33, %v434_v33  ;;  %v445_v39 = vadd.f32 %v872_v37, %v1000_v17  ;;  %v888_v40 = vpop.f32.mrf.mxu1 }
  0xee   : > { %671 = vst.msk [vmem:[%s1008_s25 + $0x78] sm:$0xf] %vm640_vm1, %v836_v35  ;;  %v834_v41 = vpack.c.bf16 %v498_v36, %v498_v36  ;;  %v509_v42 = vadd.f32 %v888_v40, %v1000_v17  ;;  %v436_v43 = vpop.f32.mrf.mxu0 }
  0xef   : > { %653 = vst.msk [vmem:[%s1008_s25 + $0x30] sm:$0xf] %vm640_vm1, %v818_v38  ;;  %v821_v44 = vpack.c.bf16 %v445_v39, %v445_v39  ;;  %v437_v45 = vadd.f32 %v1000_v17, %v436_v43  ;;  %v500_v46 = vpop.f32.mrf.mxu1 }
  0xf0   : > { %669 = vst.msk [vmem:[%s1008_s25 + $0x70] sm:$0xf] %vm640_vm1, %v834_v41  ;;  %v837_v47 = vpack.c.bf16 %v509_v42, %v509_v42  ;;  %v501_v48 = vadd.f32 %v1000_v17, %v500_v46 }
  0xf1   : > { %656 = vst.msk [vmem:[%s1008_s25 + $0x3c] sm:$0xf] %vm640_vm1, %v821_v44  ;;  %v819_v49 = vpack.c.bf16 %v437_v45, %v437_v45 }
  0xf2   : > { %672 = vst.msk [vmem:[%s1008_s25 + $0x7c] sm:$0xf] %vm640_vm1, %v837_v47  ;;  %v835_v50 = vpack.c.bf16 %v501_v48, %v501_v48 }
  0xf3   : > { %654 = vst.msk [vmem:[%s1008_s25 + $0x34] sm:$0xf] %vm640_vm1, %v819_v49 }
  0xf4   : > { %670 = vst.msk [vmem:[%s1008_s25 + $0x74] sm:$0xf] %vm640_vm1, %v835_v50 }
  0xf5 PF: > { %s13_s12 = sadd.s32 1, %s922_s12  }
  0xf6   : > { %p10_p4 = scmp.ge.s32.totalorder %s13_s12, 4  }
  0xf8   :  { %12 = sbr.rel (!%p10_p4) target bundleno = 1 (0x1), region = 62 }

// kernel: gcunet2_decoder_forward.3
= control target key start
LH: loop header
LB: loop body
LE: loop exit
PB: predicated region body
PF: predicated region fallthrough
CT: control target
= control target key end

     0   :  { %s1559_s12 = smov 0   ;;  %s1561_s13 = smov 0   ;;  %s1763_s0 = inlined_call_operand.vmem [shape: bf16[2,1024,72], index: 0, kind: input, shape index: {}]   ;;  %s1764_s1 = inlined_call_operand.vmem [shape: bf16[16,72], index: 1, kind: input, shape index: {}]   ;;  %s1765_s2 = inlined_call_operand.vmem [shape: f32[16,1], index: 2, kind: input, shape index: {}]   ;;  %s1766_s3 = inlined_call_operand.vmem [shape: f32[2,8,1024], index: 3, kind: output, shape index: {}]  }
   0x1   :  { %s1563_s14 = smov 0  }
   0x2 LB: > { %s25_s15 = sadd.s32 1, %s1532_s13  ;;  %p1201_p0 = scmp.ge.s32.totalorder %s1536_s14, 1  ;;  %s1536_s14 = sphi %s1563_s14, %s13_s14   ;;  %s1532_s13 = sphi %s1561_s13, %s1768_s13   ;;  %s1528_s12 = sphi %s1559_s12, %s1767_s12  }
   0x3   : > { %p27_p1 = scmp.ge.s32.totalorder %s25_s15, 2  ;;  %p158_p2 = scmp.lt.s32.totalorder %s1536_s14, 3 }
   0x5   : > { %s1770_s15 = smov (%p27_p1, %s25_s15), 0  ;;  %p159_p3 = pnand %p1201_p0, %p158_p2 }
   0x6   : > { %p191_p4 = scmp.lt.s32.totalorder (!%p159_p3), %s1528_s12, 1 }
   0x7   : > { %162 = sbr.rel (%p159_p3) target bundleno = 383 (0x17f), region = 32 }
   0xc   : > { %v1580_v0 = vld [vmem:[%s1764_s1] sm:$0xff]   ;;  %s1772_s12 = smov (!%p191_p4, %s1528_s12), 1  ;;  %vm678_vm0 = vcmask 588800   ;;  %v1538_v11 = vmov 0   ;;  %v342_v54 = vld [vmem:[%s1765_s2 + $0x8] sm:$0xff] }
   0xd   : > { %1303 = vmatprep.mubr.msk.bf16.mxu0 %vm678_vm0, %v1580_v0  ;;  %1321 = vmatprep.mubr.msk.bf16.mxu1 %vm678_vm0, %v1580_v0  ;;  %s1285_s18 = sshll.u32 %s1772_s12, 9  ;;  %v341_v59 = vld [vmem:[%s1765_s2] sm:$0xff]  ;;  %s1286_s26 = sshll.u32 %s1772_s12, 6 }
   0xe   : > { %s1592_s21 = scalar_lea.vmem %s1763_s0, %s1285_s18  ;;  %1416 = vset.pattern.permute.xlu0 %v1538_v11  ;;  %s1744_s29 = scalar_lea.vmem %s1766_s3, %s1286_s26 }
   0xf   : > { %v1417_v1 = vld [vmem:[%s1592_s21 + $0x78] sm:$0xff]   ;;  %v1421_v6 = vld [vmem:[%s1592_s21 + $0x70] sm:$0xff]   ;;  %v1425_v13 = vld [vmem:[%s1592_s21 + $0x68] sm:$0xff]   ;;  %350 = vperm.xlu0 %1416, %v342_v54  }
  0x10   : > { %v1418_v2 = vld [vmem:[%s1592_s21 + $0xf8] sm:$0xff]   ;;  %1359 = vmatprep.subr.msk.bf16.mxu0 %vm678_vm0, %v1417_v1  ;;  %v1422_v8 = vld [vmem:[%s1592_s21 + $0xf0] sm:$0xff]   ;;  %v1426_v15 = vld [vmem:[%s1592_s21 + $0xe8] sm:$0xff]  }
  0x11   : > { %v1419_v3 = vld [vmem:[%s1592_s21 + $0x38] sm:$0xff]   ;;  %1367 = vmatprep.subr.msk.bf16.mxu1 %vm678_vm0, %v1418_v2  ;;  %v1423_v9 = vld [vmem:[%s1592_s21 + $0x30] sm:$0xff]   ;;  %v1427_v16 = vld [vmem:[%s1592_s21 + $0x28] sm:$0xff]  }
  0x12   : > { %v1420_v4 = vld [vmem:[%s1592_s21 + $0xb8] sm:$0xff]   ;;  %v704_v5 = vsel %vm678_vm0, %v1419_v3, 0  ;;  %v1424_v10 = vld [vmem:[%s1592_s21 + $0xb0] sm:$0xff]   ;;  %v701_v12 = vsel %vm678_vm0, %v1423_v9, 0  ;;  %v1428_v17 = vld [vmem:[%s1592_s21 + $0xa8] sm:$0xff]   ;;  %v698_v18 = vsel %vm678_vm0, %v1427_v16, 0 }
  0x13   : > { %1288 = vmatpush3.bf16.xpose.msra.mxu0 %v704_v5  ;;  %v752_v7 = vsel %vm678_vm0, %v1420_v4, 0  ;;  %v749_v14 = vsel %vm678_vm0, %v1424_v10, 0  ;;  %v1429_v19 = vld [vmem:[%s1592_s21 + $0x60] sm:$0xff]   ;;  %v746_v20 = vsel %vm678_vm0, %v1428_v17, 0  ;;  %v1433_v25 = vld [vmem:[%s1592_s21 + $0x58] sm:$0xff]   ;;  %v1437_v31 = vld [vmem:[%s1592_s21 + $0x50] sm:$0xff]   ;;  %345 = vperm.xlu0 %1416, %v341_v59  }
  0x14   : > { %1306 = vmatpush3.bf16.xpose.msra.mxu1 %v752_v7  ;;  %1360 = vmatprep.subr.msk.bf16.mxu0 %vm678_vm0, %v1421_v6  ;;  %v1430_v21 = vld [vmem:[%s1592_s21 + $0xe0] sm:$0xff]   ;;  %v1434_v27 = vld [vmem:[%s1592_s21 + $0xd8] sm:$0xff]   ;;  %v1438_v33 = vld [vmem:[%s1592_s21 + $0xd0] sm:$0xff]  }
  0x15   : > { %1368 = vmatprep.subr.msk.bf16.mxu1 %vm678_vm0, %v1422_v8  ;;  %v1431_v22 = vld [vmem:[%s1592_s21 + $0x20] sm:$0xff]   ;;  %v1435_v28 = vld [vmem:[%s1592_s21 + $0x18] sm:$0xff]   ;;  %v1439_v34 = vld [vmem:[%s1592_s21 + $0x10] sm:$0xff]  }
  0x16   : > { %v1432_v23 = vld [vmem:[%s1592_s21 + $0xa0] sm:$0xff]   ;;  %v695_v24 = vsel %vm678_vm0, %v1431_v22, 0  ;;  %v1436_v29 = vld [vmem:[%s1592_s21 + $0x98] sm:$0xff]   ;;  %v692_v30 = vsel %vm678_vm0, %v1435_v28, 0  ;;  %v1440_v35 = vld [vmem:[%s1592_s21 + $0x90] sm:$0xff]   ;;  %v689_v36 = vsel %vm678_vm0, %v1439_v34, 0 }
  0x17   : > { %v743_v26 = vsel %vm678_vm0, %v1432_v23, 0  ;;  %v740_v32 = vsel %vm678_vm0, %v1436_v29, 0  ;;  %v1441_v37 = vld [vmem:[%s1592_s21 + $0x48] sm:$0xff]   ;;  %v737_v38 = vsel %vm678_vm0, %v1440_v35, 0  ;;  %v1445_v43 = vld [vmem:[%s1592_s21 + $0x40] sm:$0xff]   ;;  %v1450_v49 = vld [vmem:[%s1592_s21 + $0x178] sm:$0xff]  }
  0x18   : > { %v1442_v39 = vld [vmem:[%s1592_s21 + $0xc8] sm:$0xff]   ;;  %v1446_v45 = vld [vmem:[%s1592_s21 + $0xc0] sm:$0xff]   ;;  %v1451_v51 = vld [vmem:[%s1592_s21 + $0x1f8] sm:$0xff]  }
  0x19   : > { %v1443_v40 = vld [vmem:[%s1592_s21 + $0x8] sm:$0xff]   ;;  %v1447_v46 = vld [vmem:[%s1592_s21] sm:$0xff]   ;;  %v1452_v52 = vld [vmem:[%s1592_s21 + $0x138] sm:$0xff]  }
  0x1a   : > { %v1444_v41 = vld [vmem:[%s1592_s21 + $0x88] sm:$0xff]   ;;  %v686_v42 = vsel %vm678_vm0, %v1443_v40, 0  ;;  %v1448_v47 = vld [vmem:[%s1592_s21 + $0x80] sm:$0xff]   ;;  %v683_v48 = vsel %vm678_vm0, %v1447_v46, 0  ;;  %v1453_v53 = vld [vmem:[%s1592_s21 + $0x1b8] sm:$0xff]   ;;  %v800_v55 = vsel %vm678_vm0, %v1452_v52, 0 }
  0x1b   : > { %1290 = vmatpush3.bf16.xpose.msra.mxu0 %v701_v12  ;;  %v734_v44 = vsel %vm678_vm0, %v1444_v41, 0  ;;  %v731_v50 = vsel %vm678_vm0, %v1448_v47, 0  ;;  %v1454_v56 = vld [vmem:[%s1592_s21 + $0x170] sm:$0xff]   ;;  %v848_v57 = vsel %vm678_vm0, %v1453_v53, 0  ;;  %v1458_v63 = vld [vmem:[%s1592_s21 + $0x168] sm:$0xff]   ;;  %v1462_v6 = vld [vmem:[%s1592_s21 + $0x160] sm:$0xff]  }
  0x1c   : > { %1308 = vmatpush3.bf16.xpose.msra.mxu1 %v749_v14  ;;  %1361 = vmatprep.subr.msk.bf16.mxu0 %vm678_vm0, %v1425_v13  ;;  %v1455_v58 = vld [vmem:[%s1592_s21 + $0x1f0] sm:$0xff]   ;;  %v1459_v2 = vld [vmem:[%s1592_s21 + $0x1e8] sm:$0xff]   ;;  %v1463_v8 = vld [vmem:[%s1592_s21 + $0x1e0] sm:$0xff]  }
  0x1d   : > { %1369 = vmatprep.subr.msk.bf16.mxu1 %vm678_vm0, %v1426_v15  ;;  %v1456_v60 = vld [vmem:[%s1592_s21 + $0x130] sm:$0xff]   ;;  %v1460_v3 = vld [vmem:[%s1592_s21 + $0x128] sm:$0xff]   ;;  %v1464_v9 = vld [vmem:[%s1592_s21 + $0x120] sm:$0xff]  }
  0x1e   : > { %v1457_v61 = vld [vmem:[%s1592_s21 + $0x1b0] sm:$0xff]   ;;  %v797_v62 = vsel %vm678_vm0, %v1456_v60, 0  ;;  %v1461_v4 = vld [vmem:[%s1592_s21 + $0x1a8] sm:$0xff]   ;;  %v794_v5 = vsel %vm678_vm0, %v1460_v3, 0  ;;  %v1465_v10 = vld [vmem:[%s1592_s21 + $0x1a0] sm:$0xff]   ;;  %v791_v11 = vsel %vm678_vm0, %v1464_v9, 0 }
  0x1f   : > { %v845_v1 = vsel %vm678_vm0, %v1457_v61, 0  ;;  %v842_v7 = vsel %vm678_vm0, %v1461_v4, 0  ;;  %v1466_v12 = vld [vmem:[%s1592_s21 + $0x158] sm:$0xff]   ;;  %v839_v13 = vsel %vm678_vm0, %v1465_v10, 0  ;;  %v1473_v22 = vld [vmem:[%s1592_s21 + $0x190] sm:$0xff]   ;;  %v1477_v28 = vld [vmem:[%s1592_s21 + $0x188] sm:$0xff]  }
  0x20   : > { %v1467_v14 = vld [vmem:[%s1592_s21 + $0x1d8] sm:$0xff]   ;;  %v1481_v34 = vld [vmem:[%s1592_s21 + $0x180] sm:$0xff]  }
  0x21   : > { %v1468_v15 = vld [vmem:[%s1592_s21 + $0x118] sm:$0xff]  }
  0x22   : > { %v1469_v16 = vld [vmem:[%s1592_s21 + $0x198] sm:$0xff]   ;;  %v788_v17 = vsel %vm678_vm0, %v1468_v15, 0 }
  0x23   : > { %1292 = vmatpush3.bf16.xpose.msra.mxu0 %v698_v18  ;;  %v1470_v18 = vld [vmem:[%s1592_s21 + $0x150] sm:$0xff]  }
  0x24   : > { %1310 = vmatpush3.bf16.xpose.msra.mxu1 %v746_v20  ;;  %1362 = vmatprep.subr.msk.bf16.mxu0 %vm678_vm0, %v1429_v19  ;;  %v836_v19 = vsel %vm678_vm0, %v1469_v16, 0  ;;  %v1471_v20 = vld [vmem:[%s1592_s21 + $0x1d0] sm:$0xff]  }
  0x25   : > { %1370 = vmatprep.subr.msk.bf16.mxu1 %vm678_vm0, %v1430_v21  ;;  %v1472_v21 = vld [vmem:[%s1592_s21 + $0x110] sm:$0xff]  }
  0x26   : > { %v785_v23 = vsel %vm678_vm0, %v1472_v21, 0 }
  0x2b   : > { %1294 = vmatpush3.bf16.xpose.msra.mxu0 %v695_v24  ;;  %v1474_v24 = vld [vmem:[%s1592_s21 + $0x148] sm:$0xff]  }
  0x2c   : > { %1312 = vmatpush3.bf16.xpose.msra.mxu1 %v743_v26  ;;  %1363 = vmatprep.subr.msk.bf16.mxu0 %vm678_vm0, %v1433_v25  ;;  %v833_v25 = vsel %vm678_vm0, %v1473_v22, 0  ;;  %v1475_v26 = vld [vmem:[%s1592_s21 + $0x1c8] sm:$0xff]  }
  0x2d   : > { %1371 = vmatprep.subr.msk.bf16.mxu1 %vm678_vm0, %v1434_v27  ;;  %v1476_v27 = vld [vmem:[%s1592_s21 + $0x108] sm:$0xff]  }
  0x2e   : > { %v782_v29 = vsel %vm678_vm0, %v1476_v27, 0 }
  0x33   : > { %1296 = vmatpush3.bf16.xpose.msra.mxu0 %v692_v30  ;;  %v1478_v30 = vld [vmem:[%s1592_s21 + $0x140] sm:$0xff]  }
  0x34   : > { %1314 = vmatpush3.bf16.xpose.msra.mxu1 %v740_v32  ;;  %1364 = vmatprep.subr.msk.bf16.mxu0 %vm678_vm0, %v1437_v31  ;;  %v830_v31 = vsel %vm678_vm0, %v1477_v28, 0  ;;  %v1479_v32 = vld [vmem:[%s1592_s21 + $0x1c0] sm:$0xff]  }
  0x35   : > { %1372 = vmatprep.subr.msk.bf16.mxu1 %vm678_vm0, %v1438_v33  ;;  %v1480_v33 = vld [vmem:[%s1592_s21 + $0x100] sm:$0xff]  }
  0x36   : > { %v779_v35 = vsel %vm678_vm0, %v1480_v33, 0 }
  0x3b   : > { %1298 = vmatpush3.bf16.xpose.msra.mxu0 %v689_v36  ;;  %v827_v36 = vsel %vm678_vm0, %v1481_v34, 0 }
  0x3c   : > { %1316 = vmatpush3.bf16.xpose.msra.mxu1 %v737_v38  ;;  %1365 = vmatprep.subr.msk.bf16.mxu0 %vm678_vm0, %v1441_v37 }
  0x3d   : > { %1373 = vmatprep.subr.msk.bf16.mxu1 %vm678_vm0, %v1442_v39 }
  0x43   : > { %1300 = vmatpush3.bf16.xpose.msra.mxu0 %v686_v42 }
  0x44   : > { %1318 = vmatpush3.bf16.xpose.msra.mxu1 %v734_v44  ;;  %1366 = vmatprep.subr.msk.bf16.mxu0 %vm678_vm0, %v1445_v43 }
  0x45   : > { %1374 = vmatprep.subr.msk.bf16.mxu1 %vm678_vm0, %v1446_v45 }
  0x4b   : > { %1302 = vmatpush3.bf16.xpose.msra.mxu0 %v683_v48 }
  0x4c   : > { %1320 = vmatpush3.bf16.xpose.msra.mxu1 %v731_v50  ;;  %1375 = vmatprep.subr.msk.bf16.mxu0 %vm678_vm0, %v1450_v49 }
  0x4d   : > { %1383 = vmatprep.subr.msk.bf16.mxu1 %vm678_vm0, %v1451_v51 }
  0x52   : > { %1304 = vmatmul.mubr.msk.bf16.vlgmr.msra.gmra.mxu0 %vm678_vm0, %v1580_v0 }
  0x53   : > { %1322 = vmatmul.mubr.msk.bf16.vlgmr.msra.gmra.mxu1 %vm678_vm0, %v1580_v0  ;;  %1324 = vmatpush3.bf16.xpose.msra.mxu0 %v800_v55 }
  0x54   : > { %1342 = vmatpush3.bf16.xpose.msra.mxu1 %v848_v57  ;;  %1376 = vmatprep.subr.msk.bf16.mxu0 %vm678_vm0, %v1454_v56 }
  0x55   : > { %1384 = vmatprep.subr.msk.bf16.mxu1 %vm678_vm0, %v1455_v58  ;;  %1339 = vmatprep.mubr.msk.bf16.mxu0 %vm678_vm0, %v1580_v0 }
  0x56   : > { %1357 = vmatprep.mubr.msk.bf16.mxu1 %vm678_vm0, %v1580_v0 }
  0x5b   : > { %1326 = vmatpush3.bf16.xpose.msra.mxu0 %v797_v62 }
  0x5c   : > { %1344 = vmatpush3.bf16.xpose.msra.mxu1 %v845_v1  ;;  %1377 = vmatprep.subr.msk.bf16.mxu0 %vm678_vm0, %v1458_v63 }
  0x5d   : > { %1385 = vmatprep.subr.msk.bf16.mxu1 %vm678_vm0, %v1459_v2 }
  0x63   : > { %1328 = vmatpush3.bf16.xpose.msra.mxu0 %v794_v5 }
  0x64   : > { %1346 = vmatpush3.bf16.xpose.msra.mxu1 %v842_v7  ;;  %1378 = vmatprep.subr.msk.bf16.mxu0 %vm678_vm0, %v1462_v6 }
  0x65   : > { %1386 = vmatprep.subr.msk.bf16.mxu1 %vm678_vm0, %v1463_v8 }
  0x6b   : > { %1330 = vmatpush3.bf16.xpose.msra.mxu0 %v791_v11 }
  0x6c   : > { %1348 = vmatpush3.bf16.xpose.msra.mxu1 %v839_v13  ;;  %1379 = vmatprep.subr.msk.bf16.mxu0 %vm678_vm0, %v1466_v12 }
  0x6d   : > { %1387 = vmatprep.subr.msk.bf16.mxu1 %vm678_vm0, %v1467_v14 }
  0x73   : > { %1332 = vmatpush3.bf16.xpose.msra.mxu0 %v788_v17 }
  0x74   : > { %1350 = vmatpush3.bf16.xpose.msra.mxu1 %v836_v19  ;;  %1380 = vmatprep.subr.msk.bf16.mxu0 %vm678_vm0, %v1470_v18 }
  0x75   : > { %1388 = vmatprep.subr.msk.bf16.mxu1 %vm678_vm0, %v1471_v20 }
  0x7b   : > { %1334 = vmatpush3.bf16.xpose.msra.mxu0 %v785_v23 }
  0x7c   : > { %1352 = vmatpush3.bf16.xpose.msra.mxu1 %v833_v25  ;;  %1381 = vmatprep.subr.msk.bf16.mxu0 %vm678_vm0, %v1474_v24 }
  0x7d   : > { %1389 = vmatprep.subr.msk.bf16.mxu1 %vm678_vm0, %v1475_v26 }
  0x83   : > { %1336 = vmatpush3.bf16.xpose.msra.mxu0 %v782_v29 }
  0x84   : > { %1354 = vmatpush3.bf16.xpose.msra.mxu1 %v830_v31  ;;  %1382 = vmatprep.subr.msk.bf16.mxu0 %vm678_vm0, %v1478_v30 }
  0x85   : > { %1390 = vmatprep.subr.msk.bf16.mxu1 %vm678_vm0, %v1479_v32 }
  0x8a   : > { %v351_v41 = vpop.permute.xlu0 %350 }
  0x8b   : > { %1338 = vmatpush3.bf16.xpose.msra.mxu0 %v779_v35 }
  0x8c   : > { %1356 = vmatpush3.bf16.xpose.msra.mxu1 %v827_v36 }
  0x8e   : > { %v346_v61 = vpop.permute.xlu0 %345 }
  0x92   : > { %1340 = vmatmul.mubr.msk.bf16.vlgmr.msra.gmra.mxu0 %vm678_vm0, %v1580_v0 }
  0x93   : > { %1358 = vmatmul.mubr.msk.bf16.vlgmr.msra.gmra.mxu1 %vm678_vm0, %v1580_v0 }
 0x112   : > { %v908_v37 = vpop.f32.mrf.mxu0 }
 0x113   : > { %v951_v38 = vpop.f32.mrf.mxu1  ;;  %v909_v62 = vadd.f32 %v908_v37, %v346_v61 }
 0x114   : > { %v910_v39 = vpop.f32.mrf.mxu0  ;;  %v952_v1 = vadd.f32 %v951_v38, %v346_v61 }
 0x115   : > { %v953_v40 = vpop.f32.mrf.mxu1  ;;  %v911_v3 = vadd.f32 %v910_v39, %v346_v61 }
 0x116   : > { %v912_v42 = vpop.f32.mrf.mxu0  ;;  %v954_v6 = vadd.f32 %v953_v40, %v346_v61 }
 0x117   : > { %v913_v43 = vadd.f32 %v912_v42, %v351_v41  ;;  %v955_v44 = vpop.f32.mrf.mxu1 }
 0x118   : > { %v956_v45 = vadd.f32 %v955_v44, %v351_v41  ;;  %v914_v46 = vpop.f32.mrf.mxu0 }
 0x119   : > { %v1275_v47 = vmul.f32 -1.442695, %v913_v43  ;;  %v915_v48 = vadd.f32 %v914_v46, %v351_v41  ;;  %v957_v49 = vpop.f32.mrf.mxu1 }
 0x11a   : > { %v1277_v50 = vmul.f32 -1.442695, %v956_v45  ;;  %v958_v51 = vadd.f32 %v957_v49, %v351_v41 }
 0x11b   : > { %1482 = vpow2.f32 %v1275_v47  ;;  %v1276_v52 = vmul.f32 -1.442695, %v915_v48 }
 0x11c   : > { %1484 = vpow2.f32 %v1277_v50  ;;  %v1278_v53 = vmul.f32 -1.442695, %v958_v51 }
 0x11d   : > { %1486 = vpow2.f32 %v1276_v52 }
 0x11e   : > { %1488 = vpow2.f32 %v1278_v53 }
 0x128   : > { %v1483_v0 = vpop.eup %1482 }
 0x129   : > { %v1485_v54 = vpop.eup %1484  ;;  %v1070_v55 = vadd.f32 1.0, %v1483_v0 }
 0x12a   : > { %v1487_v56 = vpop.eup %1486  ;;  %v1072_v57 = vadd.f32 1.0, %v1485_v54 }
 0x12b   : > { %v1489_v58 = vpop.eup %1488  ;;  %1490 = vrcp.f32 %v1070_v55  ;;  %v1071_v59 = vadd.f32 1.0, %v1487_v56 }
 0x12c   : > { %1492 = vrcp.f32 %v1072_v57  ;;  %v1073_v60 = vadd.f32 1.0, %v1489_v58 }
 0x12d   : > { %1494 = vrcp.f32 %v1071_v59 }
 0x12e   : > { %1496 = vrcp.f32 %v1073_v60 }
 0x138   : > { %v1491_v63 = vpop.eup %1490 }
 0x139   : > { %v1493_v2 = vpop.eup %1492  ;;  %v1094_v4 = vmul.f32 %v1491_v63, %v909_v62 }
 0x13a   : > { %v1495_v5 = vpop.eup %1494  ;;  %v1096_v7 = vmul.f32 %v1493_v2, %v952_v1 }
 0x13b   : > { %v1497_v8 = vpop.eup %1496  ;;  %1102 = vst [vmem:[%s1744_s29] sm:$0xff] %v1094_v4  ;;  %v1095_v9 = vmul.f32 %v1495_v5, %v911_v3 }
 0x13c   : > { %1104 = vst [vmem:[%s1744_s29 + $0x10] sm:$0xff] %v1096_v7  ;;  %v1097_v10 = vmul.f32 %v1497_v8, %v954_v6 }
 0x13d   : > { %1103 = vst [vmem:[%s1744_s29 + $0x8] sm:$0xff] %v1095_v9 }
 0x13e   : > { %1105 = vst [vmem:[%s1744_s29 + $0x18] sm:$0xff] %v1097_v10 }
 0x152   : > { %v994_v11 = vpop.f32.mrf.mxu0 }
 0x153   : > { %v1037_v12 = vpop.f32.mrf.mxu1  ;;  %v995_v35 = vadd.f32 %v994_v11, %v346_v61 }
 0x154   : > { %v996_v13 = vpop.f32.mrf.mxu0  ;;  %v1038_v37 = vadd.f32 %v1037_v12, %v346_v61 }
 0x155   : > { %v1039_v14 = vpop.f32.mrf.mxu1  ;;  %v997_v39 = vadd.f32 %v996_v13, %v346_v61 }
 0x156   : > { %v998_v15 = vpop.f32.mrf.mxu0  ;;  %v1040_v42 = vadd.f32 %v1039_v14, %v346_v61 }
 0x157   : > { %v999_v16 = vadd.f32 %v998_v15, %v351_v41  ;;  %v1041_v17 = vpop.f32.mrf.mxu1 }
 0x158   : > { %v1042_v18 = vadd.f32 %v1041_v17, %v351_v41  ;;  %v1000_v19 = vpop.f32.mrf.mxu0 }
 0x159   : > { %v1279_v20 = vmul.f32 -1.442695, %v999_v16  ;;  %v1001_v21 = vadd.f32 %v1000_v19, %v351_v41  ;;  %v1043_v22 = vpop.f32.mrf.mxu1 }
 0x15a   : > { %v1281_v23 = vmul.f32 -1.442695, %v1042_v18  ;;  %v1044_v24 = vadd.f32 %v1043_v22, %v351_v41 }
 0x15b   : > { %1498 = vpow2.f32 %v1279_v20  ;;  %v1280_v25 = vmul.f32 -1.442695, %v1001_v21 }
 0x15c   : > { %1500 = vpow2.f32 %v1281_v23  ;;  %v1282_v26 = vmul.f32 -1.442695, %v1044_v24 }
 0x15d   : > { %1502 = vpow2.f32 %v1280_v25 }
 0x15e   : > { %1504 = vpow2.f32 %v1282_v26 }
 0x168   : > { %v1499_v27 = vpop.eup %1498 }
 0x169   : > { %v1501_v28 = vpop.eup %1500  ;;  %v1074_v29 = vadd.f32 1.0, %v1499_v27 }
 0x16a   : > { %v1503_v30 = vpop.eup %1502  ;;  %v1076_v31 = vadd.f32 1.0, %v1501_v28 }
 0x16b   : > { %v1505_v32 = vpop.eup %1504  ;;  %1506 = vrcp.f32 %v1074_v29  ;;  %v1075_v33 = vadd.f32 1.0, %v1503_v30 }
 0x16c   : > { %1508 = vrcp.f32 %v1076_v31  ;;  %v1077_v34 = vadd.f32 1.0, %v1505_v32 }
 0x16d   : > { %1510 = vrcp.f32 %v1075_v33 }
 0x16e   : > { %1512 = vrcp.f32 %v1077_v34 }
 0x178   : > { %v1507_v36 = vpop.eup %1506 }
 0x179   : > { %v1509_v38 = vpop.eup %1508  ;;  %v1098_v40 = vmul.f32 %v1507_v36, %v995_v35 }
 0x17a   : > { %v1511_v41 = vpop.eup %1510  ;;  %v1100_v43 = vmul.f32 %v1509_v38, %v1038_v37 }
 0x17b   : > { %v1513_v44 = vpop.eup %1512  ;;  %1106 = vst [vmem:[%s1744_s29 + $0x20] sm:$0xff] %v1098_v40  ;;  %v1099_v45 = vmul.f32 %v1511_v41, %v997_v39 }
 0x17c   : > { %1108 = vst [vmem:[%s1744_s29 + $0x30] sm:$0xff] %v1100_v43  ;;  %v1101_v46 = vmul.f32 %v1513_v44, %v1040_v42 }
 0x17d   : > { %1107 = vst [vmem:[%s1744_s29 + $0x28] sm:$0xff] %v1099_v45 }
 0x17e   : > { %1109 = vst [vmem:[%s1744_s29 + $0x38] sm:$0xff] %v1101_v46 }
 0x17f PF: > { %s13_s14 = sadd.s32 1, %s1536_s14   ;;  %s1767_s12 = smov %s1532_s13 }
 0x180   : > { %p10_p5 = scmp.ge.s32.totalorder %s13_s14, 4   ;;  %s1768_s13 = smov %s1770_s15 }
 0x182   :  { %12 = sbr.rel (!%p10_p5) target bundleno = 2 (0x2), region = 62 }

</bundles_post_ra>
